<compile_context>
chip_gen: v6e
topology: v6e:2x2x1
jax: 0.10.0
libtpu: 0.0.40
codegen_flags: <defaults>
</compile_context>

<pallas_src>
import functools
import math

import jax
import jax.numpy as jnp
from jax import lax
from jax.experimental import pallas as pl
from jax.experimental.pallas import tpu as pltpu

NEG_INF = -1e30   # large-negative mask value (f32-safe)
LN_EPS = 1e-5


def _vmem_capacity():
    try:
        return int(pltpu.get_tpu_info().vmem_capacity_bytes)
    except Exception:
        return 64 * 1024 * 1024


_VMEM_CAP = _vmem_capacity()
if _VMEM_CAP >= 100 * 1024 * 1024:
    # v5e / v6e: 128 MiB VMEM, weight re-stream is the bottleneck -> big row tiles.
    TM_DEFAULT, TQ_DEFAULT, TKV_DEFAULT, VMEM_LIMIT = 1024, 512, 256, 96 * 1024 * 1024
else:
    # v7x (64 MiB VMEM) or unknown: smaller tiles, leave headroom for compiler scratch.
    TM_DEFAULT, TQ_DEFAULT, TKV_DEFAULT, VMEM_LIMIT = 512, 256, 256, 44 * 1024 * 1024
TN_DEFAULT = 512


def _round_up(x, m):
    return ((x + m - 1) // m) * m


def _tile_rows(dim, preferred):
    """Largest multiple-of-8 tile <= preferred that divides dim, else the full dim."""
    t = min(preferred, dim)
    t -= t % 8
    while t >= 8 and dim % t:
        t -= 8
    return t if t >= 8 and dim % t == 0 else dim


def _tile_lanes(dim, preferred):
    """Largest multiple-of-128 tile <= preferred that divides dim, else the full dim."""
    t = min(preferred, dim)
    t -= t % 128
    while t >= 128 and dim % t:
        t -= 128
    return t if t >= 128 and dim % t == 0 else dim


def _cparams(sem):
    return pltpu.CompilerParams(dimension_semantics=sem, vmem_limit_bytes=VMEM_LIMIT)


def _gelu_new(x):
    c = jnp.float32(math.sqrt(2.0 / math.pi))
    return 0.5 * x * (1.0 + jnp.tanh(c * (x + 0.044715 * x * x * x)))


def _layernorm(x, g, b):
    mean = jnp.mean(x, axis=-1, keepdims=True)
    xc = x - mean
    var = jnp.mean(xc * xc, axis=-1, keepdims=True)
    return xc * lax.rsqrt(var + LN_EPS) * g + b


# ----------------- fused LayerNorm (computed once per row tile) + matmul + bias -----------------

def _ln_matmul_kernel(x_ref, g_ref, b_ref, w_ref, bias_ref, o_ref, ln_sc):
    @pl.when(pl.program_id(1) == 0)
    def _():
        ln_sc[...] = _layernorm(x_ref[...], g_ref[...], b_ref[...]).astype(ln_sc.dtype)

    y = jnp.dot(ln_sc[...], w_ref[...], preferred_element_type=jnp.float32)
    o_ref[...] = (y + bias_ref[...]).astype(o_ref.dtype)


def ln_matmul(x, g, b, w, bias, out_dtype=jnp.bfloat16):
    M, H = x.shape
    N = w.shape[1]
    tm = _tile_rows(M, TM_DEFAULT)
    tn = _tile_lanes(N, 768)
    return pl.pallas_call(
        _ln_matmul_kernel,
        out_shape=jax.ShapeDtypeStruct((M, N), out_dtype),
        grid=(M // tm, N // tn),
        in_specs=[
            pl.BlockSpec((tm, H), lambda i, j: (i, 0)),
            pl.BlockSpec((1, H), lambda i, j: (0, 0)),
            pl.BlockSpec((1, H), lambda i, j: (0, 0)),
            pl.BlockSpec((H, tn), lambda i, j: (0, j)),
            pl.BlockSpec((1, tn), lambda i, j: (0, j)),
        ],
        out_specs=pl.BlockSpec((tm, tn), lambda i, j: (i, j)),
        scratch_shapes=[pltpu.VMEM((tm, H), jnp.bfloat16)],
        compiler_params=_cparams(("parallel", "arbitrary")),
    )(x, g.reshape(1, H), b.reshape(1, H), w, bias.reshape(1, N))


# ---------------- matmul + bias + residual (attn c_proj; full-K contraction, no scratch) ----------------

def _matmul_bias_res_kernel(x_ref, w_ref, bias_ref, res_ref, o_ref):
    y = jnp.dot(x_ref[...], w_ref[...], preferred_element_type=jnp.float32)
    o_ref[...] = (y + bias_ref[...] + res_ref[...]).astype(o_ref.dtype)


def matmul_bias_res(x, w, bias, res):
    M, K = x.shape
    N = w.shape[1]
    tm = _tile_rows(M, TM_DEFAULT)
    tn = _tile_lanes(N, 768)
    return pl.pallas_call(
        _matmul_bias_res_kernel,
        out_shape=jax.ShapeDtypeStruct((M, N), jnp.float32),
        grid=(M // tm, N // tn),
        in_specs=[
            pl.BlockSpec((tm, K), lambda i, j: (i, 0)),
            pl.BlockSpec((K, tn), lambda i, j: (0, j)),
            pl.BlockSpec((1, tn), lambda i, j: (0, j)),
            pl.BlockSpec((tm, tn), lambda i, j: (i, j)),
        ],
        out_specs=pl.BlockSpec((tm, tn), lambda i, j: (i, j)),
        compiler_params=_cparams(("parallel", "parallel")),
    )(x, w, bias.reshape(1, N), res)


# ---------------- fused MLP block: LN -> c_fc -> gelu_new -> c_proj -> +residual ----------------

def _mlp_kernel(x_ref, g_ref, b_ref, w1_ref, b1_ref, w2_ref, b2_ref, o_ref,
                ln_sc, acc_sc):
    k = pl.program_id(1)

    @pl.when(k == 0)
    def _():
        ln_sc[...] = _layernorm(x_ref[...], g_ref[...], b_ref[...]).astype(ln_sc.dtype)
        acc_sc[...] = jnp.zeros_like(acc_sc)

    h = jnp.dot(ln_sc[...], w1_ref[...],
                preferred_element_type=jnp.float32) + b1_ref[...]
    a = _gelu_new(h)   # TODO(synk): bf16 tanh input on v6e/v7x EUP for 2x transcendental rate
    acc_sc[...] += jnp.dot(a.astype(w2_ref.dtype), w2_ref[...],
                           preferred_element_type=jnp.float32)

    @pl.when(k == pl.num_programs(1) - 1)
    def _():
        o_ref[...] = (acc_sc[...] + b2_ref[...] + x_ref[...]).astype(o_ref.dtype)


def mlp_block(x, g, b, w1, b1, w2, b2):
    M, H = x.shape
    K = w1.shape[1]                               # n_inner (4H)
    tm = _tile_rows(M, TM_DEFAULT)
    tk = _tile_lanes(K, 512)
    return pl.pallas_call(
        _mlp_kernel,
        out_shape=jax.ShapeDtypeStruct((M, H), jnp.float32),
        grid=(M // tm, K // tk),
        in_specs=[
            pl.BlockSpec((tm, H), lambda i, k: (i, 0)),
            pl.BlockSpec((1, H), lambda i, k: (0, 0)),
            pl.BlockSpec((1, H), lambda i, k: (0, 0)),
            pl.BlockSpec((H, tk), lambda i, k: (0, k)),
            pl.BlockSpec((1, tk), lambda i, k: (0, k)),
            pl.BlockSpec((tk, H), lambda i, k: (k, 0)),
            pl.BlockSpec((1, H), lambda i, k: (0, 0)),
        ],
        out_specs=pl.BlockSpec((tm, H), lambda i, k: (i, 0)),
        scratch_shapes=[pltpu.VMEM((tm, H), jnp.bfloat16),
                        pltpu.VMEM((tm, H), jnp.float32)],
        compiler_params=_cparams(("parallel", "arbitrary")),
    )(x, g.reshape(1, H), b.reshape(1, H), w1, b1.reshape(1, K), w2, b2.reshape(1, H))


# ------------------------------- flash attention -------------------------------
# Grid (B*heads, S/tq); K/V blocked as the full (1, S, hd) sequence per head and swept
# inside the kernel with a causal- and length-bounded fori_loop (no kv grid axis, no
# materialized mask array).  Assumes right-padding (valid tokens are a prefix).

def _flash_kernel(lens_ref, q_ref, k_ref, v_ref, o_ref, *, scale, tkv, n_head):
    qi = pl.program_id(1)
    b = pl.program_id(0) // n_head
    valid_len = lens_ref[b]

    q = q_ref[0]                                   # (tq, hd) bf16
    tq, hd = q.shape

    causal_kv = ((qi + 1) * tq + tkv - 1) // tkv            # chunks up to causal frontier
    pad_kv = jnp.maximum((valid_len + tkv - 1) // tkv, 1)   # chunks with any valid key
    num_kv = jnp.minimum(causal_kv, pad_kv)

    def body(ki, carry):
        m, l, acc = carry
        start = pl.multiple_of(ki * tkv, tkv)
        kb = k_ref[0, pl.ds(start, tkv), :]
        vb = v_ref[0, pl.ds(start, tkv), :]
        s = lax.dot_general(q, kb, (((1,), (1,)), ((), ())),
                            preferred_element_type=jnp.float32) * scale
        q_pos = qi * tq + lax.broadcasted_iota(jnp.int32, (tq, tkv), 0)
        k_pos = start + lax.broadcasted_iota(jnp.int32, (tq, tkv), 1)
        valid = jnp.logical_and(k_pos <= q_pos, k_pos < valid_len)
        s = jnp.where(valid, s, NEG_INF)
        m_new = jnp.maximum(m, jnp.max(s, axis=-1, keepdims=True))
        alpha = jnp.exp(m - m_new)
        p = jnp.exp(s - m_new)
        l = alpha * l + jnp.sum(p, axis=-1, keepdims=True)
        acc = alpha * acc + lax.dot_general(p.astype(vb.dtype), vb,
                                            (((1,), (0,)), ((), ())),
                                            preferred_element_type=jnp.float32)
        return m_new, l, acc

    m0 = jnp.full((tq, 1), NEG_INF, jnp.float32)
    l0 = jnp.zeros((tq, 1), jnp.float32)
    a0 = jnp.zeros((tq, hd), jnp.float32)
    _, l, acc = lax.fori_loop(0, num_kv, body, (m0, l0, a0))
    o_ref[0] = (acc * pl.reciprocal(l, approx=True)).astype(o_ref.dtype)


def flash_attention(q, k, v, lens, n_head):
    BH, S, hd = q.shape
    tq = _tile_rows(S, TQ_DEFAULT)
    tkv = _tile_rows(S, TKV_DEFAULT)
    scale = 1.0 / math.sqrt(hd)
    grid_spec = pltpu.PrefetchScalarGridSpec(
        num_scalar_prefetch=1,
        grid=(BH, S // tq),
        in_specs=[
            pl.BlockSpec((1, tq, hd), lambda bh, qi, lens_ref: (bh, qi, 0)),
            pl.BlockSpec((1, S, hd), lambda bh, qi, lens_ref: (bh, 0, 0)),
            pl.BlockSpec((1, S, hd), lambda bh, qi, lens_ref: (bh, 0, 0)),
        ],
        out_specs=pl.BlockSpec((1, tq, hd), lambda bh, qi, lens_ref: (bh, qi, 0)),
    )
    return pl.pallas_call(
        functools.partial(_flash_kernel, scale=scale, tkv=tkv, n_head=n_head),
        out_shape=jax.ShapeDtypeStruct((BH, S, hd), jnp.bfloat16),
        grid_spec=grid_spec,
        compiler_params=_cparams(("parallel", "parallel")),
    )(lens, q, k, v)


# ----------- fused ln_f + tied lm_head + shifted cross-entropy (logits + loss in one pass) -----------

def _lm_head_ce_kernel(x_ref, g_ref, b_ref, wte_ref, lbl_ref,
                       logits_ref, sum_ref, cnt_ref,
                       ln_sc, m_sc, l_sc, p_sc, *, v_actual):
    i = pl.program_id(0)
    j = pl.program_id(1)
    nj = pl.num_programs(1)
    tv = logits_ref.shape[1]

    @pl.when(jnp.logical_and(i == 0, j == 0))
    def _():
        sum_ref[...] = jnp.zeros_like(sum_ref)
        cnt_ref[...] = jnp.zeros_like(cnt_ref)

    @pl.when(j == 0)
    def _():
        ln_sc[...] = _layernorm(x_ref[...], g_ref[...], b_ref[...]).astype(ln_sc.dtype)
        m_sc[...] = jnp.full_like(m_sc, NEG_INF)
        l_sc[...] = jnp.zeros_like(l_sc)
        p_sc[...] = jnp.zeros_like(p_sc)

    # logits tile = LN(x) @ wte_tile^T   (tied weights, no bias, no wte.T in HBM)
    logits = lax.dot_general(ln_sc[...], wte_ref[...], (((1,), (1,)), ((), ())),
                             preferred_element_type=jnp.float32)      # (tm, tv)
    logits_ref[...] = logits

    labels = lbl_ref[...]                                             # (tm, 1) int32
    vocab_ids = j * tv + lax.broadcasted_iota(jnp.int32, logits.shape, 1)
    s = jnp.where(vocab_ids < v_actual, logits, NEG_INF)              # mask padded vocab cols

    m_prev = m_sc[...]
    m_new = jnp.maximum(m_prev, jnp.max(s, axis=-1, keepdims=True))
    l_sc[...] = l_sc[...] * jnp.exp(m_prev - m_new) + jnp.sum(
        jnp.exp(s - m_new), axis=-1, keepdims=True)
    m_sc[...] = m_new
    p_sc[...] += jnp.sum(jnp.where(vocab_ids == labels, logits, 0.0),
                         axis=-1, keepdims=True)

    @pl.when(j == nj - 1)
    def _():
        valid = (labels >= 0).astype(jnp.float32)                     # ignore_index = -100
        nll = (m_sc[...] + jnp.log(l_sc[...]) - p_sc[...]) * valid
        sum_ref[...] += jnp.sum(nll).reshape(1, 1)
        cnt_ref[...] += jnp.sum(valid).reshape(1, 1)


def lm_head_loss(x, g, b, wte, shift_labels):
    M, H = x.shape
    V = wte.shape[0]
    if V <= TN_DEFAULT:
        tv, Vp = V, V
    else:
        tv = TN_DEFAULT
        Vp = _round_up(V, tv)                       # handles V=50257 -> 50688
    wte_p = wte if Vp == V else jnp.pad(wte, ((0, Vp - V), (0, 0)))
    tm = _tile_rows(M, TM_DEFAULT)

    logits_p, loss_sum, count = pl.pallas_call(
        functools.partial(_lm_head_ce_kernel, v_actual=V),
        out_shape=(jax.ShapeDtypeStruct((M, Vp), jnp.float32),
                   jax.ShapeDtypeStruct((1, 1), jnp.float32),
                   jax.ShapeDtypeStruct((1, 1), jnp.float32)),
        grid=(M // tm, Vp // tv),
        in_specs=[
            pl.BlockSpec((tm, H), lambda i, j: (i, 0)),
            pl.BlockSpec((1, H), lambda i, j: (0, 0)),
            pl.BlockSpec((1, H), lambda i, j: (0, 0)),
            pl.BlockSpec((tv, H), lambda i, j: (j, 0)),
            pl.BlockSpec((tm, 1), lambda i, j: (i, 0)),
        ],
        out_specs=(pl.BlockSpec((tm, tv), lambda i, j: (i, j)),
                   pl.BlockSpec((1, 1), lambda i, j: (0, 0)),
                   pl.BlockSpec((1, 1), lambda i, j: (0, 0))),
        scratch_shapes=[pltpu.VMEM((tm, H), jnp.bfloat16),
                        pltpu.VMEM((tm, 1), jnp.float32),
                        pltpu.VMEM((tm, 1), jnp.float32),
                        pltpu.VMEM((tm, 1), jnp.float32)],
        # global scalar loss accumulator lives across the whole grid -> sequential axes
        compiler_params=_cparams(("arbitrary", "arbitrary")),
    )(x, g.reshape(1, H), b.reshape(1, H), wte_p, shift_labels)

    logits = logits_p if Vp == V else logits_p[:, :V]
    # NOTE: if every shifted label is -100 this is NaN (0/0), matching HF behavior.
    return logits, loss_sum[0, 0] / count[0, 0]


# ------------------------------- model (glue + kernels) -------------------------------

def init_params(key, vocab, n_pos, n_embd, n_layer, n_inner):
    # TODO(synk): load real pretrained 'gpt2' weights; synthetic GPT2-style init here
    # (std=0.02 weights, zero biases, unit LN gains).  Matmul weights stored in bf16.
    keys = jax.random.split(key, 2 + n_layer * 4)
    std = 0.02
    params = {
        'wte': (jax.random.normal(keys[0], (vocab, n_embd), jnp.float32) * std
                ).astype(jnp.bfloat16),
        'wpe': jax.random.normal(keys[1], (n_pos, n_embd), jnp.float32) * std,
        'ln_f_g': jnp.ones((n_embd,), jnp.float32),
        'ln_f_b': jnp.zeros((n_embd,), jnp.float32),
        'layers': [],
    }
    for i in range(n_layer):
        k = keys[2 + i * 4: 2 + (i + 1) * 4]
        params['layers'].append({
            'ln1_g': jnp.ones((n_embd,), jnp.float32),
            'ln1_b': jnp.zeros((n_embd,), jnp.float32),
            'c_attn_w': (jax.random.normal(k[0], (n_embd, 3 * n_embd), jnp.float32) * std
                         ).astype(jnp.bfloat16),
            'c_attn_b': jnp.zeros((3 * n_embd,), jnp.float32),
            'attn_proj_w': (jax.random.normal(k[1], (n_embd, n_embd), jnp.float32) * std
                            ).astype(jnp.bfloat16),
            'attn_proj_b': jnp.zeros((n_embd,), jnp.float32),
            'ln2_g': jnp.ones((n_embd,), jnp.float32),
            'ln2_b': jnp.zeros((n_embd,), jnp.float32),
            'c_fc_w': (jax.random.normal(k[2], (n_embd, n_inner), jnp.float32) * std
                       ).astype(jnp.bfloat16),
            'c_fc_b': jnp.zeros((n_inner,), jnp.float32),
            'mlp_proj_w': (jax.random.normal(k[3], (n_inner, n_embd), jnp.float32) * std
                           ).astype(jnp.bfloat16),
            'mlp_proj_b': jnp.zeros((n_embd,), jnp.float32),
        })
    return params


def gpt2_forward(params, input_ids, attention_mask, labels, *, n_head):
    B, S = input_ids.shape
    V, H = params['wte'].shape
    hd = H // n_head
    BH = B * n_head
    M = B * S

    # token + position embeddings (gather stays in JAX glue)
    h = (jnp.take(params['wte'], input_ids, axis=0).astype(jnp.float32)
         + params['wpe'][:S][None, :, :])
    h2 = h.reshape(M, H)

    # per-batch valid lengths; scalar-prefetched into SMEM inside flash attention
    # (assumes right-padded attention masks, the standard case).
    lens = jnp.sum(attention_mask.astype(jnp.int32), axis=1)

    # TODO(synk): head split/merge transposes remain XLA glue; reading q/k/v straight out
    # of the packed (B,S,3H) tensor needs hd-wide (<128) lane blocks, which the (8,128)
    # BlockSpec constraint disallows for hd=64.
    def split_heads(x):   # (M, H) -> (B*nh, S, hd)
        return x.reshape(B, S, n_head, hd).transpose(0, 2, 1, 3).reshape(BH, S, hd)

    def merge_heads(x):   # (B*nh, S, hd) -> (M, H)
        return x.reshape(B, n_head, S, hd).transpose(0, 2, 1, 3).reshape(M, H)

    for lp in params['layers']:
        # --- attention block: LN1 fused into c_attn; residual fused into c_proj ---
        qkv = ln_matmul(h2, lp['ln1_g'], lp['ln1_b'], lp['c_attn_w'], lp['c_attn_b'])
        q, k, v = jnp.split(qkv, 3, axis=-1)
        a = flash_attention(split_heads(q), split_heads(k), split_heads(v), lens, n_head)
        h2 = matmul_bias_res(merge_heads(a), lp['attn_proj_w'], lp['attn_proj_b'], h2)

        # --- MLP block: LN2 + fc + gelu_new + proj + residual in one fused kernel ---
        h2 = mlp_block(h2, lp['ln2_g'], lp['ln2_b'], lp['c_fc_w'], lp['c_fc_b'],
                       lp['mlp_proj_w'], lp['mlp_proj_b'])

    # HF shift handled per-row: row (b, s) is scored against labels[b, s+1]; the last row
    # of each sequence gets -100 (ignored) -> no logits[:, :-1] slice copy in HBM.
    shift_labels = jnp.concatenate(
        [labels[:, 1:], jnp.full((B, 1), -100, labels.dtype)], axis=1
    ).reshape(M, 1).astype(jnp.int32)

    logits_flat, loss = lm_head_loss(h2, params['ln_f_g'], params['ln_f_b'],
                                     params['wte'], shift_labels)
    return loss, logits_flat.reshape(B, S, V)


if __name__ == "__main__":
    B, S = 2, 8
    VOCAB, N_POS, N_EMBD, N_HEAD, N_LAYER, N_INNER = 64, 16, 32, 2, 2, 128

    key = jax.random.PRNGKey(0)
    pkey, ikey = jax.random.split(key)
    params = init_params(pkey, VOCAB, N_POS, N_EMBD, N_LAYER, N_INNER)

    input_ids = jax.random.randint(ikey, (B, S), 0, VOCAB, dtype=jnp.int32)
    attention_mask = jnp.ones((B, S), dtype=jnp.int32)
    labels = input_ids  # standard LM-correction setup

    loss, logits = gpt2_forward(params, input_ids, attention_mask, labels, n_head=N_HEAD)
    jax.block_until_ready((loss, logits))
    assert logits.shape == (B, S, VOCAB) and loss.shape == ()
    assert bool(jnp.isfinite(loss))
    print("KERNEL_OK")
</pallas_src>

<mosaic_0001>
module attributes {stable_mosaic.version = 11 : i64} {
  func.func @_ln_matmul_kernel(%arg0: i32, %arg1: i32, %arg2: memref<16x32xf32, #tpu.memory_space<vmem>>, %arg3: memref<1x32xf32, #tpu.memory_space<vmem>>, %arg4: memref<1x32xf32, #tpu.memory_space<vmem>>, %arg5: memref<32x96xbf16, #tpu.memory_space<vmem>>, %arg6: memref<1x96xf32, #tpu.memory_space<vmem>>, %arg7: memref<16x96xbf16, #tpu.memory_space<vmem>>, %arg8: memref<16x32xbf16, #tpu.memory_space<vmem>>) attributes {dimension_semantics = [#tpu.dimension_semantics<parallel>, #tpu.dimension_semantics<arbitrary>], iteration_bounds = array<i64: 1, 1>, scalar_prefetch = 0 : i64, scratch_operands = 1 : i64, tpu.core_type = #tpu.core_type<tc>, window_params = [{transform_indices = @transform_0, window_bounds = array<i64: 16, 32>}, {pipeline_mode = #tpu.pipeline_mode<synchronous>, transform_indices = @transform_1, window_bounds = array<i64: 1, 32>}, {pipeline_mode = #tpu.pipeline_mode<synchronous>, transform_indices = @transform_2, window_bounds = array<i64: 1, 32>}, {transform_indices = @transform_3, window_bounds = array<i64: 32, 96>}, {transform_indices = @transform_4, window_bounds = array<i64: 1, 96>}, {transform_indices = @transform_5, window_bounds = array<i64: 16, 96>}]} {
    %c0_i32 = arith.constant 0 : i32
    %0 = arith.cmpi eq, %arg1, %c0_i32 : i32
    %1 = arith.extui %0 : i1 to i32
    %c0_i32_0 = arith.constant 0 : i32
    %2 = arith.cmpi ne, %1, %c0_i32_0 : i32
    scf.if %2 {
      %c0_8 = arith.constant 0 : index
      %c0_9 = arith.constant 0 : index
      %11 = vector.load %arg2[%c0_8, %c0_9] : memref<16x32xf32, #tpu.memory_space<vmem>>, vector<16x32xf32>
      %c0_10 = arith.constant 0 : index
      %c0_11 = arith.constant 0 : index
      %12 = vector.load %arg3[%c0_10, %c0_11] : memref<1x32xf32, #tpu.memory_space<vmem>>, vector<1x32xf32>
      %c0_12 = arith.constant 0 : index
      %c0_13 = arith.constant 0 : index
      %13 = vector.load %arg4[%c0_12, %c0_13] : memref<1x32xf32, #tpu.memory_space<vmem>>, vector<1x32xf32>
      %cst_14 = arith.constant dense<0.000000e+00> : vector<16xf32>
      %14 = vector.multi_reduction <add>, %11, %cst_14 [1] : vector<16x32xf32> to vector<16xf32>
      %15 = vector.shape_cast %14 : vector<16xf32> to vector<16x1xf32>
      %cst_15 = arith.constant 3.200000e+01 : f32
      %16 = vector.broadcast %cst_15 : f32 to vector<16x1xf32>
      %17 = arith.divf %15, %16 : vector<16x1xf32>
      %18 = vector.broadcast %17 : vector<16x1xf32> to vector<16x32xf32>
      %19 = arith.subf %11, %18 : vector<16x32xf32>
      %20 = arith.mulf %19, %19 : vector<16x32xf32>
      %cst_16 = arith.constant dense<0.000000e+00> : vector<16xf32>
      %21 = vector.multi_reduction <add>, %20, %cst_16 [1] : vector<16x32xf32> to vector<16xf32>
      %22 = vector.shape_cast %21 : vector<16xf32> to vector<16x1xf32>
      %cst_17 = arith.constant 3.200000e+01 : f32
      %23 = vector.broadcast %cst_17 : f32 to vector<16x1xf32>
      %24 = arith.divf %22, %23 : vector<16x1xf32>
      %cst_18 = arith.constant 9.99999974E-6 : f32
      %25 = vector.broadcast %cst_18 : f32 to vector<16x1xf32>
      %26 = arith.addf %24, %25 : vector<16x1xf32>
      %27 = math.rsqrt %26 : vector<16x1xf32>
      %28 = vector.broadcast %27 : vector<16x1xf32> to vector<16x32xf32>
      %29 = arith.mulf %19, %28 : vector<16x32xf32>
      %30 = vector.broadcast %12 : vector<1x32xf32> to vector<16x32xf32>
      %31 = arith.mulf %29, %30 : vector<16x32xf32>
      %32 = vector.broadcast %13 : vector<1x32xf32> to vector<16x32xf32>
      %33 = arith.addf %31, %32 : vector<16x32xf32>
      %34 = arith.truncf %33 : vector<16x32xf32> to vector<16x32xbf16>
      %c0_19 = arith.constant 0 : index
      %c0_20 = arith.constant 0 : index
      %35 = vector.load %arg8[%c0_19, %c0_20] : memref<16x32xbf16, #tpu.memory_space<vmem>>, vector<16x32xbf16>
      tpu.vector_store %arg8[%c0_19, %c0_20], %34 {strides = array<i32>} : memref<16x32xbf16, #tpu.memory_space<vmem>>, vector<16x32xbf16>,
    } else {
    }
    %c0 = arith.constant 0 : index
    %c0_1 = arith.constant 0 : index
    %3 = vector.load %arg8[%c0, %c0_1] : memref<16x32xbf16, #tpu.memory_space<vmem>>, vector<16x32xbf16>
    %c0_2 = arith.constant 0 : index
    %c0_3 = arith.constant 0 : index
    %4 = vector.load %arg5[%c0_2, %c0_3] : memref<32x96xbf16, #tpu.memory_space<vmem>>, vector<32x96xbf16>
    %cst = arith.constant dense<0.000000e+00> : vector<16x96xf32>
    %5 = tpu.matmul %3, %4, %cst {dimension_numbers = #tpu.dot_dimension_numbers<[1], [0], [0], [1], [0, 0, 1, 1], [], []>} : vector<16x32xbf16>, vector<32x96xbf16>, vector<16x96xf32> -> vector<16x96xf32>
    %c0_4 = arith.constant 0 : index
    %c0_5 = arith.constant 0 : index
    %6 = vector.load %arg6[%c0_4, %c0_5] : memref<1x96xf32, #tpu.memory_space<vmem>>, vector<1x96xf32>
    %7 = vector.broadcast %6 : vector<1x96xf32> to vector<16x96xf32>
    %8 = arith.addf %5, %7 : vector<16x96xf32>
    %9 = arith.truncf %8 : vector<16x96xf32> to vector<16x96xbf16>
    %c0_6 = arith.constant 0 : index
    %c0_7 = arith.constant 0 : index
    %10 = vector.load %arg7[%c0_6, %c0_7] : memref<16x96xbf16, #tpu.memory_space<vmem>>, vector<16x96xbf16>
    tpu.vector_store %arg7[%c0_6, %c0_7], %9 {strides = array<i32>} : memref<16x96xbf16, #tpu.memory_space<vmem>>, vector<16x96xbf16>,
    return
  }
  func.func @transform_0(%arg0: i32, %arg1: i32) -> (i32, i32) {
    %c0_i32 = arith.constant 0 : i32
    %c0_i32_0 = arith.constant 0 : i32
    return %arg0, %c0_i32 : i32, i32
  }
  func.func @transform_1(%arg0: i32, %arg1: i32) -> (i32, i32) {
    %c0_i32 = arith.constant 0 : i32
    %c0_i32_0 = arith.constant 0 : i32
    %c0_i32_1 = arith.constant 0 : i32
    return %c0_i32, %c0_i32_0 : i32, i32
  }
  func.func @transform_2(%arg0: i32, %arg1: i32) -> (i32, i32) {
    %c0_i32 = arith.constant 0 : i32
    %c0_i32_0 = arith.constant 0 : i32
    %c0_i32_1 = arith.constant 0 : i32
    return %c0_i32, %c0_i32_0 : i32, i32
  }
  func.func @transform_3(%arg0: i32, %arg1: i32) -> (i32, i32) {
    %c0_i32 = arith.constant 0 : i32
    %c0_i32_0 = arith.constant 0 : i32
    return %c0_i32, %arg1 : i32, i32
  }
  func.func @transform_4(%arg0: i32, %arg1: i32) -> (i32, i32) {
    %c0_i32 = arith.constant 0 : i32
    %c0_i32_0 = arith.constant 0 : i32
    return %c0_i32, %arg1 : i32, i32
  }
  func.func @transform_5(%arg0: i32, %arg1: i32) -> (i32, i32) {
    %c0_i32 = arith.constant 0 : i32
    return %arg0, %arg1 : i32, i32
  }
}

</mosaic_0001>

<bundles_post_ra>
// kernel: tpu_custom_call.1
= control target key start
LH: loop header
LB: loop body
LE: loop exit
PB: predicated region body
PF: predicated region fallthrough
CT: control target
= control target key end

     0   :  { %10 = vsyncpa [#allocation4], 0  ;;  %s393_s0 = inlined_call_operand.hbm [shape: f32[16,32], index: 0, kind: input, shape index: {}]   ;;  %s394_s1 = inlined_call_operand.vmem [shape: f32[1,32], index: 1, kind: input, shape index: {}]   ;;  %s395_s2 = inlined_call_operand.vmem [shape: f32[1,32], index: 2, kind: input, shape index: {}]   ;;  %s396_s3 = inlined_call_operand.hbm [shape: bf16[32,96], index: 3, kind: input, shape index: {}]   ;;  %s397_s4 = inlined_call_operand.vmem [shape: f32[1,96], index: 4, kind: input, shape index: {}]   ;;  %s398_s5 = inlined_call_operand.hbm [shape: bf16[16,96], index: 5, kind: output, shape index: {}]  }
   0x1   :  { %11 = vsyncpa [#allocation7], 0 }
   0x2   :  { %12 = vsyncpa [#allocation5], 0  ;;  %s325_s18 = smov [#allocation3]  }
   0x3   :  { %s18_s19 = sshll.u32 %s325_s18, 4  ;;  %s19_s19 = int_to_ptr.vmem [resolvable:$true] %s18_s19 }
   0x4   :  { %s267_s20 = scalar_lea.vmem %s19_s19, 256  ;;  %p272_p1 = scmp.lt.s32.totalorder %s19_s19, %s19_s19 }
   0x5   :  { %p268_p0 = scmp.ne.s32.totalorder %s19_s19, %s267_s20  ;;  %p273_p2 = scmp.lt.s32.totalorder %s267_s20, %s267_s20 }
   0x7   :  { %p274_p3 = por %p273_p2, %p272_p1 }
   0x9   :  { %p275_p4 = pnand %p274_p3, %p268_p0 }
   0xb   :  { %278 = shalt.err (!%p275_p4)
}
   0xc   :  { %s326_s21 = smov 128   ;;  %s327_s22 = smov 8  }
   0xd   :  { %24 = dma.hbm_to_vmem [thread:$0]  %s393_s0, 256, %s19_s19, [#allocation4], %s326_s21, %s326_s21, %s327_s22  }
   0xe   :  { %s328_s25 = smov [#allocation6]  }
   0xf   :  { %s34_s26 = sshll.u32 %s328_s25, 4  ;;  %s35_s26 = int_to_ptr.vmem [resolvable:$true] %s34_s26 }
  0x10   :  { %s287_s27 = scalar_lea.vmem %s35_s26, 256  ;;  %p292_p6 = scmp.lt.s32.totalorder %s35_s26, %s35_s26 }
  0x11   :  { %p288_p5 = scmp.ne.s32.totalorder %s35_s26, %s287_s27  ;;  %p293_p7 = scmp.lt.s32.totalorder %s287_s27, %s287_s27 }
  0x13   :  { %p294_p8 = por %p293_p7, %p292_p6 }
  0x15   :  { %p295_p9 = pnand %p294_p8, %p288_p5 }
  0x17   :  { %298 = shalt.err (!%p295_p9)
}
  0x18   :  { %s329_s28 = smov 64   ;;  %s330_s29 = smov 4  }
  0x19   :  { %40 = dma.hbm_to_vmem [thread:$0]  %s396_s3, 256, %s35_s26, [#allocation7], %s329_s28, %s329_s28, %s330_s29  }
  0x1a   :  { %319 = dma.done.wait [#allocation4], 256  }
  0x1b   :  { %320 = vsyncadd [#allocation4], 4294967040 }
  0x1c   :  { %321 = dma.done.wait [#allocation7], 256  }
  0x1d   :  { %322 = vsyncadd [#allocation7], 4294967040  ;;  %vm58_vm0 = vcmask 261120   ;;  %v54_v0 = vld [vmem:[#allocation3] sm:$0xff]  ;;  %v55_v1 = vld [vmem:[#allocation3 + $0x8] sm:$0xff]  ;;  %v331_v15 = vmov 0.0  }
  0x1e   :  { %v59_v2 = vsel %vm58_vm0, %v54_v0, 0.0  ;;  %v62_v3 = vsel %vm58_vm0, %v55_v1, 0.0  ;;  %v252_v14 = vld [vmem:[#allocation6 + $0x8] sm:$0xff]   ;;  %235 = vmatprep.subr.bf16.mxu0 %v331_v15  ;;  %vm332_vm1 = vmmov 0   ;;  %v253_v16 = vld [vmem:[#allocation6] sm:$0xff]   ;;  %vm110_vm2 = vcmask 257024  }
  0x1f   :  { %60 = vadd.xlane.f32.xlu0 %v59_v2  ;;  %239 = vmatprep.mubr.msk.bf16.mxu0 %vm332_vm1, %v331_v15  ;;  %v217_v24 = vld [vmem:[%s394_s1] ss:$0 sm:$0xff]  ;;  %vm196_vm3 = vcmask 781312  }
  0x20   :  { %236 = vmatpush3.bf16.msra.mxu0 %v252_v14  ;;  %v218_v26 = vld [vmem:[%s395_s2] ss:$0 sm:$0xff]  ;;  %s333_s2 = smov [#allocation8]  }
  0x21   :  { %237 = vmatprep.subr.bf16.mxu0 %v331_v15  ;;  %v221_v36 = vld [vmem:[%s397_s4] ss:$0 sm:$0xff]  ;;  %s204_s10 = sshll.u32 %s333_s2, 4  ;;  %s205_s10 = int_to_ptr.vmem [resolvable:$true] %s204_s10 }
  0x22   :  { %s299_s11 = scalar_lea.vmem %s205_s10, 128  ;;  %p304_p11 = scmp.lt.s32.totalorder %s205_s10, %s205_s10 }
  0x23   :  { %63 = vadd.xlane.f32.xlu0 %v62_v3  ;;  %p300_p10 = scmp.ne.s32.totalorder %s205_s10, %s299_s11  ;;  %p305_p12 = scmp.lt.s32.totalorder %s299_s11, %s299_s11 }
  0x24   :  { %238 = vmatpush3.bf16.msra.mxu0 %v253_v16 }
  0x25   :  { %p306_p13 = por %p305_p12, %p304_p11 }
  0x27   :  { %p307_p0 = pnand %p306_p13, %p300_p10 }
  0xa8   :  { %v61_v4 = vpop.xlane.xlu0 %60 }
  0xa9   :  { %v66_v5 = vmul.f32 0.03125, %v61_v4 }
  0xab   :  { %v68_v6 = vsub.f32 %v54_v0, %v66_v5 }
  0xac   :  { %v64_v7 = vpop.xlane.xlu0 %63 }
  0xad   :  { %v67_v8 = vmul.f32 0.03125, %v64_v7  ;;  %v70_v9 = vmul.f32 %v68_v6, %v68_v6 }
  0xaf   :  { %v69_v10 = vsub.f32 %v55_v1, %v67_v8  ;;  %v72_v11 = vsel %vm58_vm0, %v70_v9, 0.0 }
  0xb0   :  { %73 = vadd.xlane.f32.xlu1 %v72_v11 }
  0xb1   :  { %v71_v12 = vmul.f32 %v69_v10, %v69_v10 }
  0xb3   :  { %v75_v13 = vsel %vm58_vm0, %v71_v12, 0.0 }
  0xb4   :  { %76 = vadd.xlane.f32.xlu1 %v75_v13 }
 0x139   :  { %v74_v17 = vpop.xlane.xlu1 %73 }
 0x13a   :  { %v78_v18 = vmul.f32 0.03125, %v74_v17 }
 0x13c   :  { %v80_v19 = vadd.f32 1e-05, %v78_v18 }
 0x13d   :  { %v77_v20 = vpop.xlane.xlu1 %76 }
 0x13e   :  { %255 = vrsqrt.f32 %v80_v19  ;;  %v79_v21 = vmul.f32 0.03125, %v77_v20 }
 0x140   :  { %v81_v22 = vadd.f32 1e-05, %v79_v21 }
 0x142   :  { %257 = vrsqrt.f32 %v81_v22 }
 0x14b   :  { %v256_v23 = vpop.eup %255 }
 0x14c   :  { %v84_v25 = vmul.f32 %v256_v23, %v68_v6 }
 0x14e   :  { %v92_v27 = vmul.f32 %v217_v24, %v84_v25 }
 0x14f   :  { %v258_v28 = vpop.eup %257 }
 0x150   :  { %v100_v29 = vadd.f32 %v218_v26, %v92_v27  ;;  %v85_v30 = vmul.f32 %v258_v28, %v69_v10 }
 0x152   :  { %v228_v31 = vpack.c.bf16 %v100_v29, %v100_v29  ;;  %v93_v32 = vmul.f32 %v217_v24, %v85_v30 }
 0x154   :  { %111 = vst.msk [vmem:[#allocation2] sm:$0xf] %vm110_vm2, %v228_v31  ;;  %v101_v33 = vadd.f32 %v218_v26, %v93_v32 }
 0x156   :  { %v229_v34 = vpack.c.bf16 %v101_v33, %v101_v33 }
 0x158   :  { %112 = vst.msk [vmem:[#allocation2 + $0x4] sm:$0xf] %vm110_vm2, %v229_v34 }
 0x15f   :  { %v254_v35 = vld [vmem:[#allocation2] sm:$0xff]  }
 0x160   :  { %240 = vmatmul.mubr.msk.bf16.vlgmr.msra.gmra.mxu0 %vm58_vm0, %v254_v35 }
 0x220   :  { %v181_v37 = vpop.f32.mrf.mxu0 }
 0x221   :  { %v182_v38 = vadd.f32 %v221_v36, %v181_v37 }
 0x222   :  { %v241_v39 = vpop.f32.mrf.mxu0 }
 0x223   :  { %v230_v40 = vpack.c.bf16 %v182_v38, %v182_v38 }
 0x224   :  { %v184_v41 = vpop.f32.mrf.mxu0 }
 0x225   :  { %v185_v42 = vadd.f32 %v221_v36, %v184_v41  ;;  %197 = vst.msk [vmem:[#allocation8] sm:$0xf] %vm196_vm3, %v230_v40 }
 0x226   :  { %v242_v43 = vpop.f32.mrf.mxu0 }
 0x227   :  { %v231_v44 = vpack.c.bf16 %v185_v42, %v185_v42 }
 0x229   :  { %198 = vst.msk [vmem:[#allocation8 + $0x4] sm:$0xf] %vm196_vm3, %v231_v44 }
 0x22a   :  { %310 = shalt.err (!%p307_p0)
}
 0x22b   :  { %210 = dma.vmem_to_hbm [thread:$0]  %s205_s10, 128, %s398_s5, [#allocation5], %s329_s28, %s329_s28, %s330_s29  }
 0x22c   :  { %323 = dma.done.wait [#allocation5], 128  }
 0x22d   :  { %324 = vsyncadd [#allocation5], 4294967168 }
 0x22e   :  { %214 = vsyncpa [#allocation4], 1 }
 0x22f   :  { %215 = vsyncpa [#allocation7], 1 }
 0x230   :  { %216 = vsyncpa [#allocation5], 1 }

</bundles_post_ra>
